<compile_context>
chip_gen: v5e
topology: v5e:2x2
jax: 0.10.0
libtpu: 0.0.40
codegen_flags: <defaults>
</compile_context>

<pallas_src>
import functools

import jax
import jax.numpy as jnp
from jax.experimental import pallas as pl
from jax.experimental.pallas import tpu as pltpu


# ----------------------------------------------------------------------------
# In-kernel math helpers
# ----------------------------------------------------------------------------
def _gelu_erf(x):
    # PyTorch nn.GELU() default is the exact erf-based GELU.  erf is computed
    # with the Abramowitz & Stegun 7.1.26 rational approximation
    # (|err| < 1.5e-7), which uses only exp/abs/select and lowers cleanly.
    a1, a2, a3, a4, a5 = 0.254829592, -0.284496736, 1.421413741, -1.453152027, 1.061405429
    p = 0.3275911
    z = x * 0.7071067811865476  # x / sqrt(2)
    s = jnp.where(z >= 0.0, 1.0, -1.0)
    az = jnp.abs(z)
    t = 1.0 / (1.0 + p * az)
    poly = ((((a5 * t + a4) * t + a3) * t + a2) * t + a1) * t
    erf = s * (1.0 - poly * jnp.exp(-az * az))
    return 0.5 * x * (1.0 + erf)


# ----------------------------------------------------------------------------
# Fused kernel: whole network for one batch row, channels-first (C, T)
# ----------------------------------------------------------------------------
def _fused_kernel(x_ref, mean_ref, std_ref,
                  w0_ref, b0_ref, sc0_ref, sh0_ref,
                  w1_ref, b1_ref, sc1_ref, sh1_ref,
                  w2_ref, b2_ref, sc2_ref, sh2_ref,
                  wh_ref, bh_ref,
                  o_ref, *, ks, dils, p0):
    Cin = x_ref.shape[1]

    # Input normalisation.
    x = (x_ref[0] - mean_ref[...]) / std_ref[...]                  # (Cin, T)

    # ReplicationPad1d((p0, 0)) folded in-kernel: replicate the first timestep
    # (lane-broadcast of column 0) -- no padded copy ever hits HBM.
    if p0 > 0:
        h = jnp.concatenate(
            [jnp.broadcast_to(x[:, :1], (Cin, p0)), x], axis=1)    # (Cin, T+p0)
    else:
        h = x

    def conv_bn_gelu(h, w, b, sc, sh, K, dil):
        # Causal dilated Conv1d as a single MXU matmul: build the im2col
        # matrix (K*Cin, L_out) by stacking the K shifted views along the
        # sublane axis (channel counts are kept multiples of 8 -> aligned),
        # then one dot instead of K tiny-contraction matmuls.
        L_out = h.shape[1] - dil * (K - 1)
        cols = [h[:, t * dil: t * dil + L_out] for t in range(K)]
        xim = cols[0] if K == 1 else jnp.concatenate(cols, axis=0)  # (K*Cin, L_out)
        y = jnp.dot(w, xim, preferred_element_type=jnp.float32)     # (Cout, L_out)
        # Conv bias, then eval-mode BatchNorm affine, then GELU (lane-dense).
        return _gelu_erf((y + b) * sc + sh)

    (k0, k1, k2), (dl0, dl1, dl2) = ks, dils
    h = conv_bn_gelu(h, w0_ref[...], b0_ref[...], sc0_ref[...], sh0_ref[...], k0, dl0)
    h = conv_bn_gelu(h, w1_ref[...], b1_ref[...], sc1_ref[...], sh1_ref[...], k1, dl1)
    h = conv_bn_gelu(h, w2_ref[...], b2_ref[...], sc2_ref[...], sh2_ref[...], k2, dl2)

    # Head: 1x1 Conv1d and Linear folded into one matmul, then Tanh.
    y = jnp.dot(wh_ref[...], h, preferred_element_type=jnp.float32) + bh_ref[...]
    o_ref[0] = jnp.tanh(y)                                         # (Dout, T)


# ----------------------------------------------------------------------------
# Wrapper: one pallas_call, grid over batch (parallel -> both v7x TCs)
# ----------------------------------------------------------------------------
def basenet_forward(us, params, *, ks, ds):
    k0, k1, k2, k3 = ks
    d0, d1, _ = ds
    assert k3 == 1, "conv3 is a 1x1 convolution in BaseNet"
    p0 = (k0 - 1) + d0 * (k1 - 1) + d0 * d1 * (k2 - 1)

    B, T, Cin = us.shape
    Dout = params["wl"].shape[0]

    # Layout plumbing: channels-first (time on lanes) for the fused kernel.
    x_cf = jnp.transpose(us, (0, 2, 1))                            # (B, Cin, T)

    # Pad the input channel count up to a multiple of 8 so the in-kernel
    # im2col stacks are sublane-aligned (zero channels, zero weights: exact).
    mean_u, std_u, w0 = params["mean_u"], params["std_u"], params["w0"]
    Cin_p = ((Cin + 7) // 8) * 8
    if Cin_p != Cin:
        cpad = Cin_p - Cin
        x_cf = jnp.pad(x_cf, ((0, 0), (0, cpad), (0, 0)))
        mean_u = jnp.pad(mean_u, ((0, cpad), (0, 0)))
        std_u = jnp.pad(std_u, ((0, cpad), (0, 0)), constant_values=1.0)
        c0_ = w0.shape[0]
        w0 = jnp.pad(w0.reshape(c0_, k0, Cin),
                     ((0, 0), (0, 0), (0, cpad))).reshape(c0_, k0 * Cin_p)

    # Exact algebraic fold of the 1x1 conv + Linear head.
    wh = params["wl"] @ params["w3"]                               # (Dout, c2)
    bh = params["wl"] @ params["b3"] + params["bl"]                # (Dout, 1)

    def full_spec(a):
        nd = a.ndim
        return pl.BlockSpec(a.shape, lambda b: (0,) * nd)

    kern = functools.partial(_fused_kernel, ks=(k0, k1, k2),
                             dils=(1, d0, d0 * d1), p0=p0)

    args = (x_cf, mean_u, std_u,
            w0, params["b0"], params["sc0"], params["sh0"],
            params["w1"], params["b1"], params["sc1"], params["sh1"],
            params["w2"], params["b2"], params["sc2"], params["sh2"],
            wh, bh)
    in_specs = [pl.BlockSpec((1, Cin_p, T), lambda b: (b, 0, 0))]
    in_specs += [full_spec(a) for a in args[1:]]

    out_cf = pl.pallas_call(
        kern,
        out_shape=jax.ShapeDtypeStruct((B, Dout, T), jnp.float32),
        grid=(B,),
        in_specs=in_specs,
        out_specs=pl.BlockSpec((1, Dout, T), lambda b: (b, 0, 0)),
        compiler_params=pltpu.CompilerParams(
            # Batch axis marked parallel so v7x's two TensorCores both work.
            dimension_semantics=("parallel",),
            # Raise the scoped-VMEM cap (v5e default is only 16 MiB) while
            # staying under v7x's 64 MiB physical VMEM.
            vmem_limit_bytes=48 * 1024 * 1024,
        ),
    )(*args)

    return jnp.transpose(out_cf, (0, 2, 1))                        # (B, T, Dout)


# ----------------------------------------------------------------------------
# Parameter setup (deterministic, mirrors the PyTorch module's shapes)
# ----------------------------------------------------------------------------
def init_params(key, in_dim, out_dim, c0, ks):
    c1, c2 = 2 * c0, 4 * c0
    k0, k1, k2, k3 = ks
    eps = 1e-5

    def conv_w(k, K, cin, cout):
        # PyTorch Conv1d default init bound; stored pre-flattened for im2col:
        # w[o, t*cin + c] == torch_conv_weight[o, c, t].
        bound = 1.0 / (cin * K) ** 0.5
        return jax.random.uniform(k, (cout, K * cin), jnp.float32, -bound, bound)

    def conv_b(k, K, cin, cout):
        bound = 1.0 / (cin * K) ** 0.5
        return jax.random.uniform(k, (cout, 1), jnp.float32, -bound, bound)

    keys = jax.random.split(key, 12)
    lb = 1.0 / out_dim ** 0.5
    params = {
        "mean_u": 0.1 * jax.random.normal(keys[0], (in_dim, 1), jnp.float32),
        "std_u": 1.0 + 0.1 * jax.random.uniform(keys[1], (in_dim, 1), jnp.float32),
        "w0": conv_w(keys[2], k0, in_dim, c0), "b0": conv_b(keys[3], k0, in_dim, c0),
        "w1": conv_w(keys[4], k1, c0, c1),     "b1": conv_b(keys[5], k1, c0, c1),
        "w2": conv_w(keys[6], k2, c1, c2),     "b2": conv_b(keys[7], k2, c1, c2),
        # conv3 has kernel size 1 -> plain (out_dim, c2) matmul weight.
        "w3": conv_w(keys[8], k3, c2, out_dim), "b3": conv_b(keys[9], k3, c2, out_dim),
        # Linear(out_dim, out_dim): (out_features, in_features) as in PyTorch.
        "wl": jax.random.uniform(keys[10], (out_dim, out_dim), jnp.float32, -lb, lb),
        "bl": jax.random.uniform(keys[11], (out_dim, 1), jnp.float32, -lb, lb),
    }
    # BatchNorm (eval, fresh-module defaults): scale = gamma/sqrt(var+eps),
    # shift = beta - running_mean*scale.
    for name, c in (("0", c0), ("1", c1), ("2", c2)):
        params["sc" + name] = jnp.full((c, 1), 1.0 / (1.0 + eps) ** 0.5, jnp.float32)
        params["sh" + name] = jnp.zeros((c, 1), jnp.float32)
    return params


# ----------------------------------------------------------------------------
# Pure-JAX reference (same math, unfused, unfolded head) for a sanity check.
# ----------------------------------------------------------------------------
def reference_forward(us, params, *, ks, ds):
    k0, k1, k2, _ = ks
    d0, d1, _ = ds
    p0 = (k0 - 1) + d0 * (k1 - 1) + d0 * d1 * (k2 - 1)
    hp = jax.lax.Precision.HIGHEST

    x = jnp.transpose(us, (0, 2, 1))                               # (B, Cin, T)
    x = (x - params["mean_u"]) / params["std_u"]
    x = jnp.concatenate([jnp.repeat(x[:, :, :1], p0, axis=2), x], axis=2)

    def conv(x, w_flat, b, sc, sh, K, dil):
        Cout = w_flat.shape[0]
        Cin = w_flat.shape[1] // K
        w = w_flat.reshape(Cout, K, Cin)
        L_out = x.shape[2] - dil * (K - 1)
        acc = sum(jnp.einsum("oc,bcl->bol", w[:, t, :],
                             x[:, :, t * dil:t * dil + L_out], precision=hp)
                  for t in range(K))
        return _gelu_erf((acc + b) * sc + sh)

    h = conv(x, params["w0"], params["b0"], params["sc0"], params["sh0"], k0, 1)
    h = conv(h, params["w1"], params["b1"], params["sc1"], params["sh1"], k1, d0)
    h = conv(h, params["w2"], params["b2"], params["sc2"], params["sh2"], k2, d0 * d1)
    y = jnp.einsum("oc,bcl->bol", params["w3"], h, precision=hp) + params["b3"]
    y = jnp.einsum("od,bdl->bol", params["wl"], y, precision=hp) + params["bl"]
    return jnp.transpose(jnp.tanh(y), (0, 2, 1))                   # (B, T, Dout)


if __name__ == "__main__":
    # Small, forward-consistent shapes.
    B, T = 2, 16
    in_dim, out_dim, c0 = 4, 8, 8
    ks = (3, 3, 3, 1)
    ds = (1, 2, 1)

    key = jax.random.PRNGKey(0)
    k_in, k_par = jax.random.split(key)
    us = jax.random.normal(k_in, (B, T, in_dim), jnp.float32)
    params = init_params(k_par, in_dim, out_dim, c0, ks)

    y = basenet_forward(us, params, ks=ks, ds=ds)
    y = jax.block_until_ready(y)
    assert y.shape == (B, T, out_dim), y.shape

    y_ref = reference_forward(us, params, ks=ks, ds=ds)
    err = float(jnp.abs(y - y_ref).max())
    # 100x tighter than before; margin left for MXU f32 pass decomposition.
    assert jnp.allclose(y, y_ref, atol=1e-4, rtol=1e-4), err

    print("KERNEL_OK")
</pallas_src>

<mosaic_0001>
module attributes {stable_mosaic.version = 11 : i64} {
  func.func @_fused_kernel(%arg0: i32, %arg1: memref<1x8x16xf32, #tpu.memory_space<vmem>>, %arg2: memref<8x1xf32, #tpu.memory_space<vmem>>, %arg3: memref<8x1xf32, #tpu.memory_space<vmem>>, %arg4: memref<8x24xf32, #tpu.memory_space<vmem>>, %arg5: memref<8x1xf32, #tpu.memory_space<vmem>>, %arg6: memref<8x1xf32, #tpu.memory_space<vmem>>, %arg7: memref<8x1xf32, #tpu.memory_space<vmem>>, %arg8: memref<16x24xf32, #tpu.memory_space<vmem>>, %arg9: memref<16x1xf32, #tpu.memory_space<vmem>>, %arg10: memref<16x1xf32, #tpu.memory_space<vmem>>, %arg11: memref<16x1xf32, #tpu.memory_space<vmem>>, %arg12: memref<32x48xf32, #tpu.memory_space<vmem>>, %arg13: memref<32x1xf32, #tpu.memory_space<vmem>>, %arg14: memref<32x1xf32, #tpu.memory_space<vmem>>, %arg15: memref<32x1xf32, #tpu.memory_space<vmem>>, %arg16: memref<8x32xf32, #tpu.memory_space<vmem>>, %arg17: memref<8x1xf32, #tpu.memory_space<vmem>>, %arg18: memref<1x8x16xf32, #tpu.memory_space<vmem>>) attributes {dimension_semantics = [#tpu.dimension_semantics<parallel>], iteration_bounds = array<i64: 2>, scalar_prefetch = 0 : i64, scratch_operands = 0 : i64, tpu.core_type = #tpu.core_type<tc>, window_params = [{transform_indices = @transform_0, window_bounds = array<i64: 1, 8, 16>}, {pipeline_mode = #tpu.pipeline_mode<synchronous>, transform_indices = @transform_1, window_bounds = array<i64: 8, 1>}, {pipeline_mode = #tpu.pipeline_mode<synchronous>, transform_indices = @transform_2, window_bounds = array<i64: 8, 1>}, {pipeline_mode = #tpu.pipeline_mode<synchronous>, transform_indices = @transform_3, window_bounds = array<i64: 8, 24>}, {pipeline_mode = #tpu.pipeline_mode<synchronous>, transform_indices = @transform_4, window_bounds = array<i64: 8, 1>}, {pipeline_mode = #tpu.pipeline_mode<synchronous>, transform_indices = @transform_5, window_bounds = array<i64: 8, 1>}, {pipeline_mode = #tpu.pipeline_mode<synchronous>, transform_indices = @transform_6, window_bounds = array<i64: 8, 1>}, {pipeline_mode = #tpu.pipeline_mode<synchronous>, transform_indices = @transform_7, window_bounds = array<i64: 16, 24>}, {pipeline_mode = #tpu.pipeline_mode<synchronous>, transform_indices = @transform_8, window_bounds = array<i64: 16, 1>}, {pipeline_mode = #tpu.pipeline_mode<synchronous>, transform_indices = @transform_9, window_bounds = array<i64: 16, 1>}, {pipeline_mode = #tpu.pipeline_mode<synchronous>, transform_indices = @transform_10, window_bounds = array<i64: 16, 1>}, {pipeline_mode = #tpu.pipeline_mode<synchronous>, transform_indices = @transform_11, window_bounds = array<i64: 32, 48>}, {pipeline_mode = #tpu.pipeline_mode<synchronous>, transform_indices = @transform_12, window_bounds = array<i64: 32, 1>}, {pipeline_mode = #tpu.pipeline_mode<synchronous>, transform_indices = @transform_13, window_bounds = array<i64: 32, 1>}, {pipeline_mode = #tpu.pipeline_mode<synchronous>, transform_indices = @transform_14, window_bounds = array<i64: 32, 1>}, {pipeline_mode = #tpu.pipeline_mode<synchronous>, transform_indices = @transform_15, window_bounds = array<i64: 8, 32>}, {pipeline_mode = #tpu.pipeline_mode<synchronous>, transform_indices = @transform_16, window_bounds = array<i64: 8, 1>}, {transform_indices = @transform_17, window_bounds = array<i64: 1, 8, 16>}]} {
    %c0 = arith.constant 0 : index
    %c0_0 = arith.constant 0 : index
    %c0_1 = arith.constant 0 : index
    %0 = vector.load %arg1[%c0, %c0_0, %c0_1] : memref<1x8x16xf32, #tpu.memory_space<vmem>>, vector<1x8x16xf32>
    %1 = vector.shape_cast %0 : vector<1x8x16xf32> to vector<8x16xf32>
    %c0_2 = arith.constant 0 : index
    %c0_3 = arith.constant 0 : index
    %2 = vector.load %arg2[%c0_2, %c0_3] : memref<8x1xf32, #tpu.memory_space<vmem>>, vector<8x1xf32>
    %3 = vector.broadcast %2 : vector<8x1xf32> to vector<8x16xf32>
    %4 = arith.subf %1, %3 : vector<8x16xf32>
    %c0_4 = arith.constant 0 : index
    %c0_5 = arith.constant 0 : index
    %5 = vector.load %arg3[%c0_4, %c0_5] : memref<8x1xf32, #tpu.memory_space<vmem>>, vector<8x1xf32>
    %6 = vector.broadcast %5 : vector<8x1xf32> to vector<8x16xf32>
    %7 = arith.divf %4, %6 : vector<8x16xf32>
    %8 = vector.extract_strided_slice %7 {offsets = [0, 0], sizes = [8, 1], strides = [1, 1]} : vector<8x16xf32> to vector<8x1xf32>
    %9 = vector.shape_cast %8 : vector<8x1xf32> to vector<8x1xf32>
    %10 = vector.broadcast %9 : vector<8x1xf32> to vector<8x8xf32>
    %11 = tpu.concatenate %10, %7 in 1 : vector<8x8xf32>, vector<8x16xf32> -> vector<8x24xf32>
    %c0_6 = arith.constant 0 : index
    %c0_7 = arith.constant 0 : index
    %12 = vector.load %arg4[%c0_6, %c0_7] : memref<8x24xf32, #tpu.memory_space<vmem>>, vector<8x24xf32>
    %c0_8 = arith.constant 0 : index
    %c0_9 = arith.constant 0 : index
    %13 = vector.load %arg5[%c0_8, %c0_9] : memref<8x1xf32, #tpu.memory_space<vmem>>, vector<8x1xf32>
    %c0_10 = arith.constant 0 : index
    %c0_11 = arith.constant 0 : index
    %14 = vector.load %arg6[%c0_10, %c0_11] : memref<8x1xf32, #tpu.memory_space<vmem>>, vector<8x1xf32>
    %c0_12 = arith.constant 0 : index
    %c0_13 = arith.constant 0 : index
    %15 = vector.load %arg7[%c0_12, %c0_13] : memref<8x1xf32, #tpu.memory_space<vmem>>, vector<8x1xf32>
    %16 = vector.extract_strided_slice %11 {offsets = [0, 0], sizes = [8, 22], strides = [1, 1]} : vector<8x24xf32> to vector<8x22xf32>
    %17 = vector.extract_strided_slice %11 {offsets = [0, 1], sizes = [8, 22], strides = [1, 1]} : vector<8x24xf32> to vector<8x22xf32>
    %18 = vector.extract_strided_slice %11 {offsets = [0, 2], sizes = [8, 22], strides = [1, 1]} : vector<8x24xf32> to vector<8x22xf32>
    %19 = tpu.concatenate %16, %17, %18 in 0 : vector<8x22xf32>, vector<8x22xf32>, vector<8x22xf32> -> vector<24x22xf32>
    %cst = arith.constant dense<0.000000e+00> : vector<8x22xf32>
    %20 = tpu.matmul %12, %19, %cst {dimension_numbers = #tpu.dot_dimension_numbers<[1], [0], [0], [1], [0, 0, 1, 1], [], []>} : vector<8x24xf32>, vector<24x22xf32>, vector<8x22xf32> -> vector<8x22xf32>
    %21 = vector.broadcast %13 : vector<8x1xf32> to vector<8x22xf32>
    %22 = arith.addf %20, %21 : vector<8x22xf32>
    %23 = vector.broadcast %14 : vector<8x1xf32> to vector<8x22xf32>
    %24 = arith.mulf %22, %23 : vector<8x22xf32>
    %25 = vector.broadcast %15 : vector<8x1xf32> to vector<8x22xf32>
    %26 = arith.addf %24, %25 : vector<8x22xf32>
    %cst_14 = arith.constant 0.707106769 : f32
    %27 = vector.broadcast %cst_14 : f32 to vector<8x22xf32>
    %28 = arith.mulf %26, %27 : vector<8x22xf32>
    %cst_15 = arith.constant 0.000000e+00 : f32
    %29 = vector.broadcast %cst_15 : f32 to vector<8x22xf32>
    %30 = arith.cmpf oge, %28, %29 : vector<8x22xf32>
    %cst_16 = arith.constant 1.000000e+00 : f32
    %cst_17 = arith.constant -1.000000e+00 : f32
    %31 = vector.broadcast %cst_16 : f32 to vector<8x22xf32>
    %32 = vector.broadcast %cst_17 : f32 to vector<8x22xf32>
    %33 = arith.select %30, %31, %32 : vector<8x22xi1>, vector<8x22xf32>
    %34 = math.absf %28 : vector<8x22xf32>
    %cst_18 = arith.constant 0.327591091 : f32
    %35 = vector.broadcast %cst_18 : f32 to vector<8x22xf32>
    %36 = arith.mulf %35, %34 : vector<8x22xf32>
    %cst_19 = arith.constant 1.000000e+00 : f32
    %37 = vector.broadcast %cst_19 : f32 to vector<8x22xf32>
    %38 = arith.addf %37, %36 : vector<8x22xf32>
    %cst_20 = arith.constant 1.000000e+00 : f32
    %39 = vector.broadcast %cst_20 : f32 to vector<8x22xf32>
    %40 = arith.divf %39, %38 : vector<8x22xf32>
    %cst_21 = arith.constant 1.06140542 : f32
    %41 = vector.broadcast %cst_21 : f32 to vector<8x22xf32>
    %42 = arith.mulf %41, %40 : vector<8x22xf32>
    %cst_22 = arith.constant -1.45315206 : f32
    %43 = vector.broadcast %cst_22 : f32 to vector<8x22xf32>
    %44 = arith.addf %42, %43 : vector<8x22xf32>
    %45 = arith.mulf %44, %40 : vector<8x22xf32>
    %cst_23 = arith.constant 1.42141378 : f32
    %46 = vector.broadcast %cst_23 : f32 to vector<8x22xf32>
    %47 = arith.addf %45, %46 : vector<8x22xf32>
    %48 = arith.mulf %47, %40 : vector<8x22xf32>
    %cst_24 = arith.constant -0.284496725 : f32
    %49 = vector.broadcast %cst_24 : f32 to vector<8x22xf32>
    %50 = arith.addf %48, %49 : vector<8x22xf32>
    %51 = arith.mulf %50, %40 : vector<8x22xf32>
    %cst_25 = arith.constant 0.254829586 : f32
    %52 = vector.broadcast %cst_25 : f32 to vector<8x22xf32>
    %53 = arith.addf %51, %52 : vector<8x22xf32>
    %54 = arith.mulf %53, %40 : vector<8x22xf32>
    %cst_26 = arith.constant 0.000000e+00 : f32
    %55 = vector.broadcast %cst_26 : f32 to vector<8x22xf32>
    %56 = arith.subf %55, %34 : vector<8x22xf32>
    %57 = arith.mulf %56, %34 : vector<8x22xf32>
    %58 = math.exp %57 : vector<8x22xf32>
    %59 = arith.mulf %54, %58 : vector<8x22xf32>
    %cst_27 = arith.constant 1.000000e+00 : f32
    %60 = vector.broadcast %cst_27 : f32 to vector<8x22xf32>
    %61 = arith.subf %60, %59 : vector<8x22xf32>
    %62 = arith.mulf %33, %61 : vector<8x22xf32>
    %cst_28 = arith.constant 5.000000e-01 : f32
    %63 = vector.broadcast %cst_28 : f32 to vector<8x22xf32>
    %64 = arith.mulf %63, %26 : vector<8x22xf32>
    %cst_29 = arith.constant 1.000000e+00 : f32
    %65 = vector.broadcast %cst_29 : f32 to vector<8x22xf32>
    %66 = arith.addf %65, %62 : vector<8x22xf32>
    %67 = arith.mulf %64, %66 : vector<8x22xf32>
    %c0_30 = arith.constant 0 : index
    %c0_31 = arith.constant 0 : index
    %68 = vector.load %arg8[%c0_30, %c0_31] : memref<16x24xf32, #tpu.memory_space<vmem>>, vector<16x24xf32>
    %c0_32 = arith.constant 0 : index
    %c0_33 = arith.constant 0 : index
    %69 = vector.load %arg9[%c0_32, %c0_33] : memref<16x1xf32, #tpu.memory_space<vmem>>, vector<16x1xf32>
    %c0_34 = arith.constant 0 : index
    %c0_35 = arith.constant 0 : index
    %70 = vector.load %arg10[%c0_34, %c0_35] : memref<16x1xf32, #tpu.memory_space<vmem>>, vector<16x1xf32>
    %c0_36 = arith.constant 0 : index
    %c0_37 = arith.constant 0 : index
    %71 = vector.load %arg11[%c0_36, %c0_37] : memref<16x1xf32, #tpu.memory_space<vmem>>, vector<16x1xf32>
    %72 = vector.extract_strided_slice %67 {offsets = [0, 0], sizes = [8, 20], strides = [1, 1]} : vector<8x22xf32> to vector<8x20xf32>
    %73 = vector.extract_strided_slice %67 {offsets = [0, 1], sizes = [8, 20], strides = [1, 1]} : vector<8x22xf32> to vector<8x20xf32>
    %74 = vector.extract_strided_slice %67 {offsets = [0, 2], sizes = [8, 20], strides = [1, 1]} : vector<8x22xf32> to vector<8x20xf32>
    %75 = tpu.concatenate %72, %73, %74 in 0 : vector<8x20xf32>, vector<8x20xf32>, vector<8x20xf32> -> vector<24x20xf32>
    %cst_38 = arith.constant dense<0.000000e+00> : vector<16x20xf32>
    %76 = tpu.matmul %68, %75, %cst_38 {dimension_numbers = #tpu.dot_dimension_numbers<[1], [0], [0], [1], [0, 0, 1, 1], [], []>} : vector<16x24xf32>, vector<24x20xf32>, vector<16x20xf32> -> vector<16x20xf32>
    %77 = vector.broadcast %69 : vector<16x1xf32> to vector<16x20xf32>
    %78 = arith.addf %76, %77 : vector<16x20xf32>
    %79 = vector.broadcast %70 : vector<16x1xf32> to vector<16x20xf32>
    %80 = arith.mulf %78, %79 : vector<16x20xf32>
    %81 = vector.broadcast %71 : vector<16x1xf32> to vector<16x20xf32>
    %82 = arith.addf %80, %81 : vector<16x20xf32>
    %cst_39 = arith.constant 0.707106769 : f32
    %83 = vector.broadcast %cst_39 : f32 to vector<16x20xf32>
    %84 = arith.mulf %82, %83 : vector<16x20xf32>
    %cst_40 = arith.constant 0.000000e+00 : f32
    %85 = vector.broadcast %cst_40 : f32 to vector<16x20xf32>
    %86 = arith.cmpf oge, %84, %85 : vector<16x20xf32>
    %cst_41 = arith.constant 1.000000e+00 : f32
    %cst_42 = arith.constant -1.000000e+00 : f32
    %87 = vector.broadcast %cst_41 : f32 to vector<16x20xf32>
    %88 = vector.broadcast %cst_42 : f32 to vector<16x20xf32>
    %89 = arith.select %86, %87, %88 : vector<16x20xi1>, vector<16x20xf32>
    %90 = math.absf %84 : vector<16x20xf32>
    %cst_43 = arith.constant 0.327591091 : f32
    %91 = vector.broadcast %cst_43 : f32 to vector<16x20xf32>
    %92 = arith.mulf %91, %90 : vector<16x20xf32>
    %cst_44 = arith.constant 1.000000e+00 : f32
    %93 = vector.broadcast %cst_44 : f32 to vector<16x20xf32>
    %94 = arith.addf %93, %92 : vector<16x20xf32>
    %cst_45 = arith.constant 1.000000e+00 : f32
    %95 = vector.broadcast %cst_45 : f32 to vector<16x20xf32>
    %96 = arith.divf %95, %94 : vector<16x20xf32>
    %cst_46 = arith.constant 1.06140542 : f32
    %97 = vector.broadcast %cst_46 : f32 to vector<16x20xf32>
    %98 = arith.mulf %97, %96 : vector<16x20xf32>
    %cst_47 = arith.constant -1.45315206 : f32
    %99 = vector.broadcast %cst_47 : f32 to vector<16x20xf32>
    %100 = arith.addf %98, %99 : vector<16x20xf32>
    %101 = arith.mulf %100, %96 : vector<16x20xf32>
    %cst_48 = arith.constant 1.42141378 : f32
    %102 = vector.broadcast %cst_48 : f32 to vector<16x20xf32>
    %103 = arith.addf %101, %102 : vector<16x20xf32>
    %104 = arith.mulf %103, %96 : vector<16x20xf32>
    %cst_49 = arith.constant -0.284496725 : f32
    %105 = vector.broadcast %cst_49 : f32 to vector<16x20xf32>
    %106 = arith.addf %104, %105 : vector<16x20xf32>
    %107 = arith.mulf %106, %96 : vector<16x20xf32>
    %cst_50 = arith.constant 0.254829586 : f32
    %108 = vector.broadcast %cst_50 : f32 to vector<16x20xf32>
    %109 = arith.addf %107, %108 : vector<16x20xf32>
    %110 = arith.mulf %109, %96 : vector<16x20xf32>
    %cst_51 = arith.constant 0.000000e+00 : f32
    %111 = vector.broadcast %cst_51 : f32 to vector<16x20xf32>
    %112 = arith.subf %111, %90 : vector<16x20xf32>
    %113 = arith.mulf %112, %90 : vector<16x20xf32>
    %114 = math.exp %113 : vector<16x20xf32>
    %115 = arith.mulf %110, %114 : vector<16x20xf32>
    %cst_52 = arith.constant 1.000000e+00 : f32
    %116 = vector.broadcast %cst_52 : f32 to vector<16x20xf32>
    %117 = arith.subf %116, %115 : vector<16x20xf32>
    %118 = arith.mulf %89, %117 : vector<16x20xf32>
    %cst_53 = arith.constant 5.000000e-01 : f32
    %119 = vector.broadcast %cst_53 : f32 to vector<16x20xf32>
    %120 = arith.mulf %119, %82 : vector<16x20xf32>
    %cst_54 = arith.constant 1.000000e+00 : f32
    %121 = vector.broadcast %cst_54 : f32 to vector<16x20xf32>
    %122 = arith.addf %121, %118 : vector<16x20xf32>
    %123 = arith.mulf %120, %122 : vector<16x20xf32>
    %c0_55 = arith.constant 0 : index
    %c0_56 = arith.constant 0 : index
    %124 = vector.load %arg12[%c0_55, %c0_56] : memref<32x48xf32, #tpu.memory_space<vmem>>, vector<32x48xf32>
    %c0_57 = arith.constant 0 : index
    %c0_58 = arith.constant 0 : index
    %125 = vector.load %arg13[%c0_57, %c0_58] : memref<32x1xf32, #tpu.memory_space<vmem>>, vector<32x1xf32>
    %c0_59 = arith.constant 0 : index
    %c0_60 = arith.constant 0 : index
    %126 = vector.load %arg14[%c0_59, %c0_60] : memref<32x1xf32, #tpu.memory_space<vmem>>, vector<32x1xf32>
    %c0_61 = arith.constant 0 : index
    %c0_62 = arith.constant 0 : index
    %127 = vector.load %arg15[%c0_61, %c0_62] : memref<32x1xf32, #tpu.memory_space<vmem>>, vector<32x1xf32>
    %128 = vector.extract_strided_slice %123 {offsets = [0, 0], sizes = [16, 16], strides = [1, 1]} : vector<16x20xf32> to vector<16x16xf32>
    %129 = vector.extract_strided_slice %123 {offsets = [0, 2], sizes = [16, 16], strides = [1, 1]} : vector<16x20xf32> to vector<16x16xf32>
    %130 = vector.extract_strided_slice %123 {offsets = [0, 4], sizes = [16, 16], strides = [1, 1]} : vector<16x20xf32> to vector<16x16xf32>
    %131 = tpu.concatenate %128, %129, %130 in 0 : vector<16x16xf32>, vector<16x16xf32>, vector<16x16xf32> -> vector<48x16xf32>
    %cst_63 = arith.constant dense<0.000000e+00> : vector<32x16xf32>
    %132 = tpu.matmul %124, %131, %cst_63 {dimension_numbers = #tpu.dot_dimension_numbers<[1], [0], [0], [1], [0, 0, 1, 1], [], []>} : vector<32x48xf32>, vector<48x16xf32>, vector<32x16xf32> -> vector<32x16xf32>
    %133 = vector.broadcast %125 : vector<32x1xf32> to vector<32x16xf32>
    %134 = arith.addf %132, %133 : vector<32x16xf32>
    %135 = vector.broadcast %126 : vector<32x1xf32> to vector<32x16xf32>
    %136 = arith.mulf %134, %135 : vector<32x16xf32>
    %137 = vector.broadcast %127 : vector<32x1xf32> to vector<32x16xf32>
    %138 = arith.addf %136, %137 : vector<32x16xf32>
    %cst_64 = arith.constant 0.707106769 : f32
    %139 = vector.broadcast %cst_64 : f32 to vector<32x16xf32>
    %140 = arith.mulf %138, %139 : vector<32x16xf32>
    %cst_65 = arith.constant 0.000000e+00 : f32
    %141 = vector.broadcast %cst_65 : f32 to vector<32x16xf32>
    %142 = arith.cmpf oge, %140, %141 : vector<32x16xf32>
    %cst_66 = arith.constant 1.000000e+00 : f32
    %cst_67 = arith.constant -1.000000e+00 : f32
    %143 = vector.broadcast %cst_66 : f32 to vector<32x16xf32>
    %144 = vector.broadcast %cst_67 : f32 to vector<32x16xf32>
    %145 = arith.select %142, %143, %144 : vector<32x16xi1>, vector<32x16xf32>
    %146 = math.absf %140 : vector<32x16xf32>
    %cst_68 = arith.constant 0.327591091 : f32
    %147 = vector.broadcast %cst_68 : f32 to vector<32x16xf32>
    %148 = arith.mulf %147, %146 : vector<32x16xf32>
    %cst_69 = arith.constant 1.000000e+00 : f32
    %149 = vector.broadcast %cst_69 : f32 to vector<32x16xf32>
    %150 = arith.addf %149, %148 : vector<32x16xf32>
    %cst_70 = arith.constant 1.000000e+00 : f32
    %151 = vector.broadcast %cst_70 : f32 to vector<32x16xf32>
    %152 = arith.divf %151, %150 : vector<32x16xf32>
    %cst_71 = arith.constant 1.06140542 : f32
    %153 = vector.broadcast %cst_71 : f32 to vector<32x16xf32>
    %154 = arith.mulf %153, %152 : vector<32x16xf32>
    %cst_72 = arith.constant -1.45315206 : f32
    %155 = vector.broadcast %cst_72 : f32 to vector<32x16xf32>
    %156 = arith.addf %154, %155 : vector<32x16xf32>
    %157 = arith.mulf %156, %152 : vector<32x16xf32>
    %cst_73 = arith.constant 1.42141378 : f32
    %158 = vector.broadcast %cst_73 : f32 to vector<32x16xf32>
    %159 = arith.addf %157, %158 : vector<32x16xf32>
    %160 = arith.mulf %159, %152 : vector<32x16xf32>
    %cst_74 = arith.constant -0.284496725 : f32
    %161 = vector.broadcast %cst_74 : f32 to vector<32x16xf32>
    %162 = arith.addf %160, %161 : vector<32x16xf32>
    %163 = arith.mulf %162, %152 : vector<32x16xf32>
    %cst_75 = arith.constant 0.254829586 : f32
    %164 = vector.broadcast %cst_75 : f32 to vector<32x16xf32>
    %165 = arith.addf %163, %164 : vector<32x16xf32>
    %166 = arith.mulf %165, %152 : vector<32x16xf32>
    %cst_76 = arith.constant 0.000000e+00 : f32
    %167 = vector.broadcast %cst_76 : f32 to vector<32x16xf32>
    %168 = arith.subf %167, %146 : vector<32x16xf32>
    %169 = arith.mulf %168, %146 : vector<32x16xf32>
    %170 = math.exp %169 : vector<32x16xf32>
    %171 = arith.mulf %166, %170 : vector<32x16xf32>
    %cst_77 = arith.constant 1.000000e+00 : f32
    %172 = vector.broadcast %cst_77 : f32 to vector<32x16xf32>
    %173 = arith.subf %172, %171 : vector<32x16xf32>
    %174 = arith.mulf %145, %173 : vector<32x16xf32>
    %cst_78 = arith.constant 5.000000e-01 : f32
    %175 = vector.broadcast %cst_78 : f32 to vector<32x16xf32>
    %176 = arith.mulf %175, %138 : vector<32x16xf32>
    %cst_79 = arith.constant 1.000000e+00 : f32
    %177 = vector.broadcast %cst_79 : f32 to vector<32x16xf32>
    %178 = arith.addf %177, %174 : vector<32x16xf32>
    %179 = arith.mulf %176, %178 : vector<32x16xf32>
    %c0_80 = arith.constant 0 : index
    %c0_81 = arith.constant 0 : index
    %180 = vector.load %arg16[%c0_80, %c0_81] : memref<8x32xf32, #tpu.memory_space<vmem>>, vector<8x32xf32>
    %cst_82 = arith.constant dense<0.000000e+00> : vector<8x16xf32>
    %181 = tpu.matmul %180, %179, %cst_82 {dimension_numbers = #tpu.dot_dimension_numbers<[1], [0], [0], [1], [0, 0, 1, 1], [], []>} : vector<8x32xf32>, vector<32x16xf32>, vector<8x16xf32> -> vector<8x16xf32>
    %c0_83 = arith.constant 0 : index
    %c0_84 = arith.constant 0 : index
    %182 = vector.load %arg17[%c0_83, %c0_84] : memref<8x1xf32, #tpu.memory_space<vmem>>, vector<8x1xf32>
    %183 = vector.broadcast %182 : vector<8x1xf32> to vector<8x16xf32>
    %184 = arith.addf %181, %183 : vector<8x16xf32>
    %185 = math.tanh %184 : vector<8x16xf32>
    %c0_85 = arith.constant 0 : index
    %c0_86 = arith.constant 0 : index
    %c0_87 = arith.constant 0 : index
    %186 = vector.load %arg18[%c0_85, %c0_86, %c0_87] : memref<1x8x16xf32, #tpu.memory_space<vmem>>, vector<1x8x16xf32>
    %187 = vector.shape_cast %186 : vector<1x8x16xf32> to vector<8x16xf32>
    %188 = vector.shape_cast %185 : vector<8x16xf32> to vector<1x8x16xf32>
    tpu.vector_store %arg18[%c0_85, %c0_86, %c0_87], %188 {strides = array<i32>} : memref<1x8x16xf32, #tpu.memory_space<vmem>>, vector<1x8x16xf32>,
    return
  }
  func.func @transform_0(%arg0: i32) -> (i32, i32, i32) {
    %c0_i32 = arith.constant 0 : i32
    %c0_i32_0 = arith.constant 0 : i32
    %c0_i32_1 = arith.constant 0 : i32
    return %arg0, %c0_i32, %c0_i32_0 : i32, i32, i32
  }
  func.func @transform_1(%arg0: i32) -> (i32, i32) {
    %c0_i32 = arith.constant 0 : i32
    %c0_i32_0 = arith.constant 0 : i32
    %c0_i32_1 = arith.constant 0 : i32
    return %c0_i32, %c0_i32_0 : i32, i32
  }
  func.func @transform_2(%arg0: i32) -> (i32, i32) {
    %c0_i32 = arith.constant 0 : i32
    %c0_i32_0 = arith.constant 0 : i32
    %c0_i32_1 = arith.constant 0 : i32
    return %c0_i32, %c0_i32_0 : i32, i32
  }
  func.func @transform_3(%arg0: i32) -> (i32, i32) {
    %c0_i32 = arith.constant 0 : i32
    %c0_i32_0 = arith.constant 0 : i32
    %c0_i32_1 = arith.constant 0 : i32
    return %c0_i32, %c0_i32_0 : i32, i32
  }
  func.func @transform_4(%arg0: i32) -> (i32, i32) {
    %c0_i32 = arith.constant 0 : i32
    %c0_i32_0 = arith.constant 0 : i32
    %c0_i32_1 = arith.constant 0 : i32
    return %c0_i32, %c0_i32_0 : i32, i32
  }
  func.func @transform_5(%arg0: i32) -> (i32, i32) {
    %c0_i32 = arith.constant 0 : i32
    %c0_i32_0 = arith.constant 0 : i32
    %c0_i32_1 = arith.constant 0 : i32
    return %c0_i32, %c0_i32_0 : i32, i32
  }
  func.func @transform_6(%arg0: i32) -> (i32, i32) {
    %c0_i32 = arith.constant 0 : i32
    %c0_i32_0 = arith.constant 0 : i32
    %c0_i32_1 = arith.constant 0 : i32
    return %c0_i32, %c0_i32_0 : i32, i32
  }
  func.func @transform_7(%arg0: i32) -> (i32, i32) {
    %c0_i32 = arith.constant 0 : i32
    %c0_i32_0 = arith.constant 0 : i32
    %c0_i32_1 = arith.constant 0 : i32
    return %c0_i32, %c0_i32_0 : i32, i32
  }
  func.func @transform_8(%arg0: i32) -> (i32, i32) {
    %c0_i32 = arith.constant 0 : i32
    %c0_i32_0 = arith.constant 0 : i32
    %c0_i32_1 = arith.constant 0 : i32
    return %c0_i32, %c0_i32_0 : i32, i32
  }
  func.func @transform_9(%arg0: i32) -> (i32, i32) {
    %c0_i32 = arith.constant 0 : i32
    %c0_i32_0 = arith.constant 0 : i32
    %c0_i32_1 = arith.constant 0 : i32
    return %c0_i32, %c0_i32_0 : i32, i32
  }
  func.func @transform_10(%arg0: i32) -> (i32, i32) {
    %c0_i32 = arith.constant 0 : i32
    %c0_i32_0 = arith.constant 0 : i32
    %c0_i32_1 = arith.constant 0 : i32
    return %c0_i32, %c0_i32_0 : i32, i32
  }
  func.func @transform_11(%arg0: i32) -> (i32, i32) {
    %c0_i32 = arith.constant 0 : i32
    %c0_i32_0 = arith.constant 0 : i32
    %c0_i32_1 = arith.constant 0 : i32
    return %c0_i32, %c0_i32_0 : i32, i32
  }
  func.func @transform_12(%arg0: i32) -> (i32, i32) {
    %c0_i32 = arith.constant 0 : i32
    %c0_i32_0 = arith.constant 0 : i32
    %c0_i32_1 = arith.constant 0 : i32
    return %c0_i32, %c0_i32_0 : i32, i32
  }
  func.func @transform_13(%arg0: i32) -> (i32, i32) {
    %c0_i32 = arith.constant 0 : i32
    %c0_i32_0 = arith.constant 0 : i32
    %c0_i32_1 = arith.constant 0 : i32
    return %c0_i32, %c0_i32_0 : i32, i32
  }
  func.func @transform_14(%arg0: i32) -> (i32, i32) {
    %c0_i32 = arith.constant 0 : i32
    %c0_i32_0 = arith.constant 0 : i32
    %c0_i32_1 = arith.constant 0 : i32
    return %c0_i32, %c0_i32_0 : i32, i32
  }
  func.func @transform_15(%arg0: i32) -> (i32, i32) {
    %c0_i32 = arith.constant 0 : i32
    %c0_i32_0 = arith.constant 0 : i32
    %c0_i32_1 = arith.constant 0 : i32
    return %c0_i32, %c0_i32_0 : i32, i32
  }
  func.func @transform_16(%arg0: i32) -> (i32, i32) {
    %c0_i32 = arith.constant 0 : i32
    %c0_i32_0 = arith.constant 0 : i32
    %c0_i32_1 = arith.constant 0 : i32
    return %c0_i32, %c0_i32_0 : i32, i32
  }
  func.func @transform_17(%arg0: i32) -> (i32, i32, i32) {
    %c0_i32 = arith.constant 0 : i32
    %c0_i32_0 = arith.constant 0 : i32
    %c0_i32_1 = arith.constant 0 : i32
    return %arg0, %c0_i32, %c0_i32_0 : i32, i32, i32
  }
}

</mosaic_0001>

<bundles_post_ra>
// kernel: tpu_custom_call.1
= control target key start
LH: loop header
LB: loop body
LE: loop exit
PB: predicated region body
PF: predicated region fallthrough
CT: control target
= control target key end

     0   :  { %s1808_s0 = inlined_call_operand.vmem [shape: f32[2,8,16], index: 0, kind: input, shape index: {}]   ;;  %s1809_s1 = inlined_call_operand.vmem [shape: f32[8,1], index: 1, kind: input, shape index: {}]   ;;  %s1810_s2 = inlined_call_operand.vmem [shape: f32[8,1], index: 2, kind: input, shape index: {}]   ;;  %s1811_s3 = inlined_call_operand.vmem [shape: f32[8,24], index: 3, kind: input, shape index: {}]   ;;  %s1812_s4 = inlined_call_operand.vmem [shape: f32[8,1], index: 4, kind: input, shape index: {}]   ;;  %s1813_s5 = inlined_call_operand.vmem [shape: f32[8,1], index: 5, kind: input, shape index: {}]   ;;  %s1814_s6 = inlined_call_operand.vmem [shape: f32[8,1], index: 6, kind: input, shape index: {}]   ;;  %s1815_s7 = inlined_call_operand.vmem [shape: f32[16,24], index: 7, kind: input, shape index: {}]   ;;  %s1816_s8 = inlined_call_operand.vmem [shape: f32[16,1], index: 8, kind: input, shape index: {}]   ;;  %s1817_s9 = inlined_call_operand.vmem [shape: f32[16,1], index: 9, kind: input, shape index: {}]   ;;  %s1818_s10 = inlined_call_operand.vmem [shape: f32[16,1], index: 10, kind: input, shape index: {}]   ;;  %s1819_s11 = inlined_call_operand.vmem [shape: f32[32,48], index: 11, kind: input, shape index: {}]   ;;  %s1820_s12 = inlined_call_operand.vmem [shape: f32[32,1], index: 12, kind: input, shape index: {}]   ;;  %s1821_s13 = inlined_call_operand.vmem [shape: f32[32,1], index: 13, kind: input, shape index: {}]   ;;  %s1822_s14 = inlined_call_operand.vmem [shape: f32[32,1], index: 14, kind: input, shape index: {}]   ;;  %s1823_s15 = inlined_call_operand.vmem [shape: f32[8,32], index: 15, kind: input, shape index: {}]   ;;  %s1824_s16 = inlined_call_operand.vmem [shape: f32[8,1], index: 16, kind: input, shape index: {}]   ;;  %s1825_s17 = inlined_call_operand.hbm [shape: f32[2,8,16], index: 17, kind: output, shape index: {}]  }
   0x1   :  { %1830 = sst [smem:[#allocation9_spill]] %s1808_s0 }
   0x2   :  { %1831 = sst [smem:[#allocation10_spill]] %s1809_s1 }
   0x3   :  { %1832 = sst [smem:[#allocation11_spill]] %s1810_s2 }
   0x4   :  { %1833 = sst [smem:[#allocation12_spill]] %s1811_s3 }
   0x5   :  { %22 = vsyncpa [#allocation3], 0 }
   0x6   :  { %24 = vsyncpa [#allocation3 + $0x1], 0  ;;  %s1516_s24 = smov 0   ;;  %s1518_s25 = smov 0  }
   0x7   :  { %s1520_s26 = smov 0   ;;  %s1522_s27 = smov 0  }
   0x8 LB: > { %1834 = sst [smem:[#allocation5_spill]] %s1414_s26  ;;  %s1537_s28 = sadd.s32 4294967295, %s1418_s27   ;;  %s1418_s27 = sphi %s1522_s27, %s1849_s27   ;;  %s1414_s26 = sphi %s1520_s26, %s1851_s26   ;;  %s1410_s25 = sphi %s1518_s25, %s1853_s25   ;;  %s1406_s24 = sphi %s1516_s24, %s1852_s24  }
   0x9   : > { %s1242_s29 = sadd.s32 4294967294, %s1418_s27   ;;  %s1541_s0 = sadd.s32 1, %s1418_s27  }
   0xa   : > { %1835 = sst [smem:[#allocation6_spill]] %s1541_s0  ;;  %s399_s30 = sadd.s32 1, %s1414_s26 }
   0xb   : > { %s396_s18 = ssub.s32 %s1418_s27, %s1541_s0  ;;  %p409_p0 = scmp.ne.s32.totalorder %s1414_s26, %s1410_s25 }
   0xc   : > { %p397_p1 = scmp.eq.s32.totalorder %s396_s18, 0  ;;  %p410_p2 = scmp.eq.s32.totalorder %s1537_s28, 1 }
   0xd   : > { %p415_p3 = scmp.ne.s32.totalorder %s1410_s25, %s1406_s24  ;;  %p416_p4 = scmp.eq.s32.totalorder %s1242_s29, 1 }
   0xe   : > { %s1552_s19 = scalar_select %p397_p1, %s1414_s26, %s399_s30  }
   0xf   : > { %p1554_p5 = por %p410_p2, %p409_p0  ;;  %p1558_p6 = por %p416_p4, %p415_p3 }
  0x10   : > { %1836 = sst [smem:[#allocation7_spill]] %s1552_s19  ;;  %p1245_p7 = scmp.ge.s32.totalorder %s1418_s27, 1 }
  0x11   : > { %s1838_s20 = scalar_select %p1558_p6, 1, 0 }
  0x12   : > { %p489_p8 = scmp.lt.s32.totalorder %s1418_s27, 3 }
  0x13   : > { %1839 = sst [smem:[#allocation8_spill]] %s1838_s20 }
  0x14   : > { %p490_p9 = pnand %p1245_p7, %p489_p8 }
  0x15   : > { %s1840_s2 = sld [smem:[#allocation11_spill]] (!%p490_p9)  ;;  %p540_p10 = scmp.lt.s32.totalorder (!%p490_p9), %s1537_s28, 1 }
  0x16   : > { %493 = sbr.rel (%p490_p9) target bundleno = 1369 (0x559), region = 88  ;;  %s1841_s30 = sld [smem:[#allocation10_spill]] (!%p490_p9) }
  0x17   : > { %s1842_s0 = sld [smem:[#allocation9_spill]] (!%p490_p9)  ;;  %s1421_s19 = smov (!%p490_p9), 8  }
  0x18   : > { %s1843_s3 = sld [smem:[#allocation12_spill]] (!%p490_p9)  ;;  %s1425_s29 = smov (!%p490_p9), 124  }
  0x1b   : > { %v552_v0 = vld [vmem:[%s1840_s2] sm:$0xff]  ;;  %v1420_v1 = vmov 0   ;;  %s541_s21 = scalar_select %p540_p10, %s1537_s28, 1  ;;  %vm581_vm4 = vcmask 64512   ;;  %v678_v24 = vld [vmem:[%s1816_s8 + $0x8] sm:$0xff]  ;;  %vm599_vm5 = vcmask 195584  }
  0x1c   : > { %1311 = vset.pattern.permute.xlu0 %v1420_v1  ;;  %1312 = vset.pattern.permute.xlu1 %v1420_v1  ;;  %v545_v2 = vld [vmem:[%s1841_s30] sm:$0xff]  ;;  %s1257_s2 = sshll.u32 %s1537_s28, 3 }
  0x1d   : > { %555 = vperm.xlu0 %1311, %v552_v0   ;;  %1313 = vset.pattern.permute.xlu2 %v1420_v1  ;;  %v584_v3 = vld [vmem:[%s1812_s4] sm:$0xff]  ;;  %s1247_s22 = sshll.u32 %s541_s21, 3  ;;  %v1424_v1 = vmov -1.0   ;;  %s1178_s23 = scalar_lea.hbm %s1825_s17, %s1257_s2 }
  0x1e   : > { %s543_s20 = scalar_lea.vmem %s1842_s0, %s1247_s22  ;;  %v585_v19 = vld [vmem:[%s1813_s5] sm:$0xff]  ;;  %s1422_s0 = smov 126  }
  0x1f   : > { %v544_v12 = vld [vmem:[%s543_s20] sm:$0xff]  ;;  %s1423_s20 = smov 127   ;;  %s1182_s18 = sshll.u32 %s1178_s23, 4  ;;  %s1183_s18 = int_to_ptr.hbm [resolvable:$true] %s1182_s18 }
  0x20   : > { %v586_v23 = vld [vmem:[%s1814_s6] sm:$0xff]  ;;  %s1370_s22 = sshra.s32 %s1183_s18, 4  ;;  %s1376_s2 = scalar_lea.hbm %s1825_s17, 16  ;;  %s1371_s22 = int_to_ptr.hbm [resolvable:$true] %s1370_s22 }
  0x21   : > { %v679_v25 = vld [vmem:[%s1817_s9] sm:$0xff]  ;;  %s1372_s28 = scalar_lea.hbm %s1371_s22, 8  ;;  %p1377_p0 = scmp.lt.s32.totalorder %s1371_s22, %s1825_s17 }
  0x22   : > { %v583_v28 = vld [vmem:[%s1843_s3] sm:$0xff]  ;;  %p1373_p11 = scmp.ne.s32.totalorder %s1371_s22, %s1372_s28  ;;  %p1378_p1 = scmp.lt.s32.totalorder %s1376_s2, %s1372_s28 }
  0x24   : > { %p1374_p12 = pnand %p1373_p11, %p1554_p5  ;;  %p1379_p2 = por %p1378_p1, %p1377_p0 }
  0x25   : > { %548 = vperm.xlu0 %1311, %v545_v2  }
  0x26   : > { %p1375_p13 = pneg %p1374_p12 }
  0x28   : > { %p1380_p3 = pnand %p1379_p2, %p1375_p13 }
  0x2d   : > { %596 = vperm.xlu0 %1311, %v584_v3  }
  0x8f   : > { %v556_v4 = vpop.permute.xlu0 %555 }
  0x90   : > { %1324 = vrcp.f32 %v556_v4  ;;  %v569_v8 = vand.u32 2147483648, %v556_v4  ;;  %v567_v10 = vand.u32 2147483647, %v556_v4  ;;  %vm563_vm1 = vweird.f32 %v556_v4 }
  0x92   : > { %v570_v14 = vor.u32 1.1754944e-38, %v569_v8  ;;  %vm568_vm3 = vcmp.eq.f32.partialorder %v567_v10, 8.507059e+37  ;;  %v677_v8 = vld [vmem:[%s1816_s8] sm:$0xff]  ;;  %v682_v10 = vld [vmem:[%s1818_s10 + $0x8] sm:$0xff] }
  0x96   : > { %v1325_v5 = vpop.eup %1324 }
  0x97   : > { %v559_v6 = vmul.f32 %v1325_v5, %v556_v4  ;;  %vm564_vm0 = vweird.f32 %v1325_v5  ;;  %v549_v11 = vpop.permute.xlu0 %548 }
  0x98   : > { %vm565_vm2 = vmor %vm563_vm1, %vm564_vm0  ;;  %v551_v15 = vsub.f32 %v544_v12, %v549_v11  ;;  %v840_v11 = vld [vmem:[%s1820_s12 + $0x18] sm:$0xff]  ;;  %v838_v12 = vld [vmem:[%s1820_s12 + $0x8] sm:$0xff] }
  0x99   : > { %v560_v7 = vsub.f32 1.0, %v559_v6 }
  0x9b   : > { %v561_v9 = vmul.f32 %v1325_v5, %v560_v7  ;;  %v680_v7 = vld [vmem:[%s1817_s9 + $0x8] sm:$0xff] }
  0x9d   : > { %v562_v13 = vadd.f32 %v1325_v5, %v561_v9  ;;  %v681_v9 = vld [vmem:[%s1818_s10] sm:$0xff] }
  0x9f   : > { %v566_v16 = vsel %vm565_vm2, %v1325_v5, %v562_v13  ;;  %v597_v29 = vpop.permute.xlu0 %596  ;;  %v837_v13 = vld [vmem:[%s1820_s12] sm:$0xff] }
  0xa0   : > { %v571_v17 = vsel %vm568_vm3, %v570_v14, %v566_v16  ;;  %v841_v14 = vld [vmem:[%s1821_s13] sm:$0xff] }
  0xa1   : > { %v572_v18 = vmul.f32 %v571_v17, %v551_v15  ;;  %v1134_v15 = vld [vmem:[%s1824_s16] sm:$0xff] }
  0xa3   : > { %575 = vperm.xlu1 %1312, %v572_v18  }
  0xab   : > { %578 = vrot.lane.b32.xlu1 %v572_v18, %s1421_s19  ;;  %v675_v18 = vld [vmem:[%s1815_s7] sm:$0xff]  ;;  %s537_s19 = sand.u32 1, %s1410_s25  }
  0xac   : > { %s1168_s21 = scalar_lea.sflag [#allocation3], %s537_s19 }
  0xb3   : > { %625 = vperm.xlu1 %1312, %v585_v19   ;;  %v676_v19 = vld [vmem:[%s1815_s7 + $0x8] sm:$0xff] }
 0x115   : > { %v576_v20 = vpop.permute.xlu1 %575 }
 0x11d   : > { %v579_v21 = vpop.permute.xlu1 %578 }
 0x11e   : > { %v582_v22 = vsel %vm581_vm4, %v576_v20, %v579_v21 }
 0x11f   : > { %591 = vrot.lane.b32.xlu2 %v582_v22, %s1422_s0 }
 0x125   : > { %v626_v32 = vpop.permute.xlu1 %625 }
 0x127   : > { %588 = vrot.lane.b32.xlu2 %v582_v22, %s1423_s20 }
 0x12f   : > { %631 = vperm.xlu2 %1313, %v586_v23  }
 0x137   : > { %697 = vperm.xlu2 %1313, %v678_v24  }
 0x13f   : > { %731 = vperm.xlu2 %1313, %v679_v25  }
 0x179   : > { %v592_v26 = vpop.permute.xlu2 %591 }
 0x17a   : > { %616 = vmatpush.msra.mxu3 %v592_v26 }
 0x181   : > { %v589_v27 = vpop.permute.xlu2 %588 }
 0x182   : > { %617 = vmatpush.msra.mxu3 %v589_v27 }
 0x184   : > { %618 = vmatpush.msra.mxu3 %v582_v22 }
 0x185   : > { %1248 = vmatmul.msk.f32.vlgmr.msra.gmra.mxu3 %vm599_vm5, %v583_v28 }
 0x189   : > { %v632_v34 = vpop.permute.xlu2 %631 }
 0x191   : > { %v698_v20 = vpop.permute.xlu2 %697 }
 0x199   : > { %v732_v25 = vpop.permute.xlu2 %731 }
 0x208   : > { %v620_v30 = vpop.f32.mrf.mxu3 }
 0x209   : > { %v621_v31 = vadd.f32 %v620_v30, %v597_v29 }
 0x20b   : > { %v628_v33 = vmul.f32 %v626_v32, %v621_v31 }
 0x20d   : > { %v634_v35 = vadd.f32 %v632_v34, %v628_v33 }
 0x20f   : > { %v635_v36 = vmul.f32 0.70710677, %v634_v35  ;;  %v672_v4 = vmul.f32 0.5, %v634_v35 }
 0x211   : > { %v638_v37 = vand.u32 2147483647, %v635_v36  ;;  %vm636_vm10 = vcmp.ge.f32.partialorder %v635_v36, 0.0 }
 0x212   : > { %v637_v2 = vsel %vm636_vm10, 1.0, %v1424_v1 }
 0x213   : > { %v639_v38 = vmul.f32 0.3275911, %v638_v37  ;;  %v665_v49 = vsub.f32 0.0, %v638_v37 }
 0x215   : > { %v640_v39 = vadd.f32 1.0, %v639_v38  ;;  %v666_v53 = vmul.f32 %v665_v49, %v638_v37 }
 0x217   : > { %1326 = vrcp.f32 %v640_v39  ;;  %v652_v43 = vand.u32 2147483648, %v640_v39  ;;  %v650_v45 = vand.u32 2147483647, %v640_v39  ;;  %vm646_vm7 = vweird.f32 %v640_v39 }
 0x218   : > { %v667_v56 = vmul.f32 1.442695, %v666_v53 }
 0x219   : > { %v653_v47 = vor.u32 1.1754944e-38, %v652_v43  ;;  %vm651_vm9 = vcmp.eq.f32.partialorder %v650_v45, 8.507059e+37 }
 0x21a   : > { %1328 = vpow2.f32 %v667_v56 }
 0x21d   : > { %v1327_v40 = vpop.eup %1326 }
 0x21e   : > { %v642_v41 = vmul.f32 %v1327_v40, %v640_v39  ;;  %vm647_vm6 = vweird.f32 %v1327_v40 }
 0x21f   : > { %vm648_vm8 = vmor %vm646_vm7, %vm647_vm6 }
 0x220   : > { %v643_v42 = vsub.f32 1.0, %v642_v41  ;;  %v1329_v62 = vpop.eup %1328 }
 0x222   : > { %v644_v44 = vmul.f32 %v1327_v40, %v643_v42 }
 0x224   : > { %v645_v46 = vadd.f32 %v1327_v40, %v644_v44 }
 0x226   : > { %v649_v48 = vsel %vm648_vm8, %v1327_v40, %v645_v46 }
 0x227   : > { %v654_v50 = vsel %vm651_vm9, %v653_v47, %v649_v48 }
 0x228   : > { %v656_v51 = vmul.f32 1.0614054, %v654_v50 }
 0x22a   : > { %v657_v52 = vadd.f32 -1.4531521, %v656_v51 }
 0x22c   : > { %v658_v54 = vmul.f32 %v657_v52, %v654_v50 }
 0x22e   : > { %v659_v55 = vadd.f32 1.4214138, %v658_v54 }
 0x230   : > { %v660_v57 = vmul.f32 %v659_v55, %v654_v50 }
 0x232   : > { %v661_v58 = vadd.f32 -0.28449672, %v660_v57 }
 0x234   : > { %v662_v59 = vmul.f32 %v661_v58, %v654_v50 }
 0x236   : > { %v663_v60 = vadd.f32 0.2548296, %v662_v59 }
 0x238   : > { %v664_v61 = vmul.f32 %v663_v60, %v654_v50 }
 0x23a   : > { %v669_v63 = vmul.f32 %v1329_v62, %v664_v61 }
 0x23c   : > { %v670_v0 = vsub.f32 1.0, %v669_v63 }
 0x23e   : > { %v671_v3 = vmul.f32 %v670_v0, %v637_v2 }
 0x240   : > { %v673_v5 = vadd.f32 1.0, %v671_v3 }
 0x242   : > { %v674_v6 = vmul.f32 %v673_v5, %v672_v4 }
 0x244   : > { %684 = vrot.lane.b32.xlu1 %v674_v6, %s1423_s20  ;;  %687 = vrot.lane.b32.xlu0 %v674_v6, %s1422_s0  ;;  %s1246_s20 = sshll.u32 %s537_s19, 3 }
 0x24c   : > { %736 = vperm.xlu1 %1312, %v680_v7   ;;  %692 = vperm.xlu0 %1311, %v677_v8  }
 0x254   : > { %743 = vperm.xlu1 %1312, %v681_v9   ;;  %748 = vperm.xlu0 %1311, %v682_v10  }
 0x25c   : > { %880 = vperm.xlu1 %1312, %v840_v11  }
 0x264   : > { %870 = vperm.xlu1 %1312, %v838_v12  }
 0x26c   : > { %865 = vperm.xlu1 %1312, %v837_v13  }
 0x274   : > { %927 = vperm.xlu1 %1312, %v841_v14  }
 0x27c   : > { %1137 = vperm.xlu1 %1312, %v1134_v15  }
 0x2b6   : > { %v688_v16 = vpop.permute.xlu0 %687  ;;  %v685_v17 = vpop.permute.xlu1 %684 }
 0x2b7   : > { %719 = vmatpush.msra.mxu1 %v688_v16 }
 0x2b9   : > { %720 = vmatpush.msra.mxu1 %v685_v17 }
 0x2bb   : > { %721 = vmatpush.msra.mxu1 %v674_v6 }
 0x2bc   : > { %1249 = vmatmul.msk.f32.vlgmr.msra.gmra.mxu1 %vm599_vm5, %v675_v18 }
 0x2be   : > { %v737_v21 = vpop.permute.xlu1 %736  ;;  %v693_v22 = vpop.permute.xlu0 %692 }
 0x2c4   : > { %1250 = vmatmul.msk.f32.gmra.mxu1 %vm599_vm5, %v676_v19  ;;  %vm883_vm5 = vcmask 392192  }
 0x2c6   : > { %v744_v27 = vpop.permute.xlu1 %743  ;;  %v749_v35 = vpop.permute.xlu0 %748 }
 0x339   : > { %v723_v23 = vpop.f32.mrf.mxu1 }
 0x33a   : > { %v724_v24 = vadd.f32 %v723_v23, %v693_v22 }
 0x33c   : > { %v739_v26 = vmul.f32 %v732_v25, %v724_v24 }
 0x33e   : > { %v1634_v28 = vadd.f32 %v744_v27, %v739_v26 }
 0x340   : > { %v1637_v29 = vmul.f32 0.70710677, %v1634_v28 }
 0x341   : > { %v726_v30 = vpop.f32.mrf.mxu1 }
 0x342   : > { %v759_v31 = vand.u32 2147483647, %v1637_v29  ;;  %v727_v32 = vadd.f32 %v726_v30, %v698_v20  ;;  %vm755_vm3 = vcmp.ge.f32.partialorder %v1637_v29, 0.0 }
 0x343   : > { %v757_v27 = vsel %vm755_vm3, 1.0, %v1424_v1 }
 0x344   : > { %v761_v33 = vmul.f32 0.3275911, %v759_v31  ;;  %v740_v34 = vmul.f32 %v737_v21, %v727_v32  ;;  %v813_v55 = vsub.f32 0.0, %v759_v31 }
 0x346   : > { %v763_v36 = vadd.f32 1.0, %v761_v33  ;;  %v1640_v37 = vadd.f32 %v749_v35, %v740_v34  ;;  %v815_v62 = vmul.f32 %v813_v55, %v759_v31  ;;  %v835_v55 = vld [vmem:[%s1819_s11 + $0x10] sm:$0xff] }
 0x348   : > { %1330 = vrcp.f32 %v763_v36  ;;  %v1643_v38 = vmul.f32 0.70710677, %v1640_v37  ;;  %v776_v45 = vand.u32 2147483648, %v763_v36  ;;  %v774_v47 = vand.u32 2147483647, %v763_v36 }
 0x349   : > { %vm770_vm12 = vweird.f32 %v763_v36  ;;  %v817_v5 = vmul.f32 1.442695, %v815_v62 }
 0x34a   : > { %v760_v39 = vand.u32 2147483647, %v1643_v38  ;;  %v777_v49 = vor.u32 1.1754944e-38, %v776_v45  ;;  %vm775_vm14 = vcmp.eq.f32.partialorder %v774_v47, 8.507059e+37  ;;  %vm756_vm4 = vcmp.ge.f32.partialorder %v1643_v38, 0.0  ;;  %v844_v38 = vld [vmem:[%s1821_s13 + $0x18] sm:$0xff] }
 0x34b   : > { %v758_v33 = vsel %vm756_vm4, 1.0, %v1424_v1  ;;  %v842_v45 = vld [vmem:[%s1821_s13 + $0x8] sm:$0xff] }
 0x34c   : > { %v762_v40 = vmul.f32 0.3275911, %v760_v39  ;;  %v814_v7 = vsub.f32 0.0, %v760_v39  ;;  %v846_v47 = vld [vmem:[%s1822_s14 + $0x8] sm:$0xff] }
 0x34e   : > { %v1331_v41 = vpop.eup %1330  ;;  %v764_v43 = vadd.f32 1.0, %v762_v40  ;;  %v816_v12 = vmul.f32 %v814_v7, %v760_v39  ;;  %v828_v39 = vmul.f32 0.5, %v1640_v37  ;;  %v843_v37 = vld [vmem:[%s1821_s13 + $0x10] sm:$0xff] }
 0x34f   : > { %v766_v42 = vmul.f32 %v1331_v41, %v763_v36  ;;  %vm771_vm11 = vweird.f32 %v1331_v41  ;;  %v827_v36 = vmul.f32 0.5, %v1634_v28  ;;  %v848_v28 = vld [vmem:[%s1822_s14 + $0x18] sm:$0xff] }
 0x350   : > { %1332 = vrcp.f32 %v764_v43  ;;  %vm772_vm13 = vmor %vm770_vm12, %vm771_vm11  ;;  %v791_v58 = vand.u32 2147483648, %v764_v43  ;;  %v789_v60 = vand.u32 2147483647, %v764_v43  ;;  %vm785_vm0 = vweird.f32 %v764_v43 }
 0x351   : > { %v767_v44 = vsub.f32 1.0, %v766_v42  ;;  %1334 = vpow2.f32 %v817_v5  ;;  %v819_v17 = vmul.f32 1.442695, %v816_v12 }
 0x352   : > { %v792_v2 = vor.u32 1.1754944e-38, %v791_v58  ;;  %vm790_vm2 = vcmp.eq.f32.partialorder %v789_v60, 8.507059e+37  ;;  %v881_v58 = vpop.permute.xlu1 %880 }
 0x353   : > { %v768_v46 = vmul.f32 %v1331_v41, %v767_v44  ;;  %1336 = vpow2.f32 %v819_v17  ;;  %v847_v44 = vld [vmem:[%s1822_s14 + $0x10] sm:$0xff] }
 0x355   : > { %v769_v48 = vadd.f32 %v1331_v41, %v768_v46  ;;  %v845_v46 = vld [vmem:[%s1822_s14] sm:$0xff] }
 0x356   : > { %v1333_v50 = vpop.eup %1332 }
 0x357   : > { %v773_v51 = vsel %vm772_vm13, %v1331_v41, %v769_v48  ;;  %v781_v53 = vmul.f32 %v1333_v50, %v764_v43  ;;  %vm786_vm15 = vweird.f32 %v1333_v50  ;;  %v1335_v19 = vpop.eup %1334  ;;  %v839_v43 = vld [vmem:[%s1820_s12 + $0x10] sm:$0xff] }
 0x358   : > { %v778_v52 = vsel %vm775_vm14, %v777_v49, %v773_v51  ;;  %vm787_vm1 = vmor %vm785_vm0, %vm786_vm15 }
 0x359   : > { %v795_v54 = vmul.f32 1.0614054, %v778_v52  ;;  %v782_v56 = vsub.f32 1.0, %v781_v53  ;;  %v1337_v26 = vpop.eup %1336 }
 0x35a   : > { %v871_v60 = vpop.permute.xlu1 %870 }
 0x35b   : > { %v797_v57 = vadd.f32 -1.4531521, %v795_v54  ;;  %v783_v59 = vmul.f32 %v1333_v50, %v782_v56  ;;  %v833_v54 = vld [vmem:[%s1819_s11] sm:$0xff]  ;;  %v834_v56 = vld [vmem:[%s1819_s11 + $0x8] sm:$0xff] }
 0x35d   : > { %v799_v61 = vmul.f32 %v797_v57, %v778_v52  ;;  %v784_v63 = vadd.f32 %v1333_v50, %v783_v59  ;;  %v836_v57 = vld [vmem:[%s1819_s11 + $0x18] sm:$0xff] }
 0x35f   : > { %v801_v0 = vadd.f32 1.4214138, %v799_v61  ;;  %v788_v3 = vsel %vm787_vm1, %v1333_v50, %v784_v63 }
 0x360   : > { %v793_v6 = vsel %vm790_vm2, %v792_v2, %v788_v3 }
 0x361   : > { %v803_v4 = vmul.f32 %v801_v0, %v778_v52  ;;  %v796_v8 = vmul.f32 1.0614054, %v793_v6 }
 0x362   : > { %v866_v63 = vpop.permute.xlu1 %865 }
 0x363   : > { %v805_v9 = vadd.f32 -0.28449672, %v803_v4  ;;  %v798_v10 = vadd.f32 -1.4531521, %v796_v8 }
 0x365   : > { %v807_v11 = vmul.f32 %v805_v9, %v778_v52  ;;  %v800_v13 = vmul.f32 %v798_v10, %v793_v6 }
 0x367   : > { %v809_v14 = vadd.f32 0.2548296, %v807_v11  ;;  %v802_v15 = vadd.f32 1.4214138, %v800_v13 }
 0x369   : > { %v811_v16 = vmul.f32 %v809_v14, %v778_v52  ;;  %v804_v18 = vmul.f32 %v802_v15, %v793_v6 }
 0x36a   : > { %v928_v5 = vpop.permute.xlu1 %927 }
 0x36b   : > { %v821_v20 = vmul.f32 %v1335_v19, %v811_v16  ;;  %v806_v21 = vadd.f32 -0.28449672, %v804_v18 }
 0x36d   : > { %v808_v22 = vmul.f32 %v806_v21, %v793_v6  ;;  %v823_v23 = vsub.f32 1.0, %v821_v20 }
 0x36f   : > { %v810_v24 = vadd.f32 0.2548296, %v808_v22  ;;  %v825_v30 = vmul.f32 %v823_v23, %v757_v27 }
 0x371   : > { %v812_v25 = vmul.f32 %v810_v24, %v793_v6  ;;  %v829_v34 = vadd.f32 1.0, %v825_v30 }
 0x373   : > { %v822_v31 = vmul.f32 %v1337_v26, %v812_v25  ;;  %v831_v40 = vmul.f32 %v829_v34, %v827_v36 }
 0x375   : > { %v824_v32 = vsub.f32 1.0, %v822_v31 }
 0x377   : > { %v826_v35 = vmul.f32 %v824_v32, %v758_v33 }
 0x379   : > { %v830_v29 = vadd.f32 1.0, %v826_v35 }
 0x37b   : > { %v832_v41 = vmul.f32 %v830_v29, %v828_v39 }
 0x37d   : > { %v1319_v42 = vpack.i.bf16 %v831_v40, %v832_v41 }
 0x37f   : > { %1320 = vrot.lane.b32.xlu0 %v1319_v42, %s1422_s0  ;;  %1315 = vrot.lane.b32.xlu2 %v1319_v42, %s1425_s29  ;;  %s539_s29 = scalar_lea.vmem [#allocation2], %s1246_s20 }
 0x380   : > { %s1180_s30 = sshll.u32 %s539_s29, 4  ;;  %s1181_s30 = int_to_ptr.vmem [resolvable:$true] %s1180_s30 }
 0x387   : > { %942 = vperm.xlu0 %1311, %v844_v38   ;;  %875 = vperm.xlu2 %1313, %v839_v43  }
 0x38f   : > { %966 = vperm.xlu0 %1311, %v848_v28   ;;  %937 = vperm.xlu2 %1313, %v843_v37  }
 0x397   : > { %961 = vperm.xlu0 %1311, %v847_v44   ;;  %932 = vperm.xlu2 %1313, %v842_v45  }
 0x39f   : > { %951 = vperm.xlu0 %1311, %v845_v46   ;;  %956 = vperm.xlu2 %1313, %v846_v47  }
 0x3d9   : > { %v1316_v48 = vpop.permute.xlu2 %1315 }
 0x3da   : > { %v1317_v49 = vunpack.i.l.bf16 %v1316_v48  ;;  %v1318_v50 = vunpack.i.h.bf16 %v1316_v48 }
 0x3dc   : > { %906 = vmatpush.msra.mxu0 %v1317_v49  ;;  %1260 = vmatpush.msra.mxu2 %v1317_v49 }
 0x3de   : > { %907 = vmatpush.msra.mxu0 %v1318_v50  ;;  %1261 = vmatpush.msra.mxu2 %v1318_v50 }
 0x3e1   : > { %v876_v61 = vpop.permute.xlu2 %875 }
 0x3e9   : > { %v938_v0 = vpop.permute.xlu2 %937 }
 0x3f1   : > { %v1321_v51 = vpop.permute.xlu0 %1320  ;;  %v933_v6 = vpop.permute.xlu2 %932 }
 0x3f2   : > { %v1322_v52 = vunpack.i.l.bf16 %v1321_v51  ;;  %v1323_v53 = vunpack.i.h.bf16 %v1321_v51 }
 0x3f4   : > { %908 = vmatpush.msra.mxu0 %v1322_v52  ;;  %1262 = vmatpush.msra.mxu2 %v1322_v52 }
 0x3f6   : > { %909 = vmatpush.msra.mxu0 %v1323_v53  ;;  %1263 = vmatpush.msra.mxu2 %v1323_v53 }
 0x3f8   : > { %910 = vmatpush.msra.mxu0 %v832_v41  ;;  %1264 = vmatpush.msra.mxu2 %v832_v41 }
 0x3f9   : > { %v943_v59 = vpop.permute.xlu0 %942  ;;  %v957_v20 = vpop.permute.xlu2 %956 }
 0x3fa   : > { %911 = vmatpush.msra.mxu0 %v831_v40  ;;  %1265 = vmatpush.msra.mxu2 %v831_v40 }
 0x3fb   : > { %1251 = vmatmul.msk.f32.vlgmr.msra.gmra.mxu0 %vm883_vm5, %v833_v54  ;;  %1253 = vmatmul.msk.f32.vlgmr.msra.gmra.mxu2 %vm883_vm5, %v835_v55 }
 0x401   : > { %v967_v62 = vpop.permute.xlu0 %966 }
 0x403   : > { %1252 = vmatmul.msk.f32.gmra.mxu0 %vm883_vm5, %v834_v56  ;;  %1254 = vmatmul.msk.f32.gmra.mxu2 %vm883_vm5, %v836_v57 }
 0x409   : > { %v962_v2 = vpop.permute.xlu0 %961 }
 0x411   : > { %v952_v8 = vpop.permute.xlu0 %951 }
 0x478   : > { %v913_v3 = vpop.f32.mrf.mxu0 }
 0x479   : > { %v914_v4 = vadd.f32 %v913_v3, %v866_v63 }
 0x47b   : > { %v945_v7 = vmul.f32 %v928_v5, %v914_v4 }
 0x47d   : > { %v1689_v9 = vadd.f32 %v952_v8, %v945_v7 }
 0x47e   : > { %v919_v10 = vpop.f32.mrf.mxu2 }
 0x47f   : > { %v1692_v11 = vmul.f32 0.70710677, %v1689_v9  ;;  %v920_v12 = vadd.f32 %v919_v10, %v876_v61 }
 0x480   : > { %v916_v13 = vpop.f32.mrf.mxu0 }
 0x481   : > { %v1695_v14 = vand.u32 2147483647, %v1692_v11  ;;  %v947_v15 = vmul.f32 %v938_v0, %v920_v12  ;;  %v917_v16 = vadd.f32 %v916_v13, %v871_v60 }
 0x483   : > { %v989_v17 = vmul.f32 0.3275911, %v1695_v14  ;;  %v1698_v18 = vadd.f32 %v962_v2, %v947_v15  ;;  %v946_v19 = vmul.f32 %v933_v6, %v917_v16 }
 0x485   : > { %v993_v21 = vadd.f32 1.0, %v989_v17  ;;  %v1701_v22 = vmul.f32 0.70710677, %v1698_v18  ;;  %v1703_v23 = vadd.f32 %v957_v20, %v946_v19 }
 0x486   : > { %v922_v24 = vpop.f32.mrf.mxu2 }
 0x487   : > { %v1706_v25 = vand.u32 2147483647, %v1701_v22  ;;  %v1709_v26 = vmul.f32 0.70710677, %v1703_v23  ;;  %v923_v27 = vadd.f32 %v922_v24, %v881_v58  ;;  %1338 = vrcp.f32 %v993_v21 }
 0x488   : > { %v1006_v45 = vand.u32 2147483647, %v993_v21  ;;  %vm1002_vm6 = vweird.f32 %v993_v21  ;;  %v1008_v51 = vand.u32 2147483648, %v993_v21 }
 0x489   : > { %v991_v30 = vmul.f32 0.3275911, %v1706_v25  ;;  %v1713_v31 = vand.u32 2147483647, %v1709_v26  ;;  %v948_v32 = vmul.f32 %v943_v59, %v923_v27  ;;  %v1095_v46 = vsub.f32 0.0, %v1706_v25 }
 0x48a   : > { %vm1729_vm9 = vcmp.eq.f32.partialorder %v1006_v45, 8.507059e+37  ;;  %v1009_v2 = vor.u32 1.1754944e-38, %v1008_v51 }
 0x48b   : > { %v995_v33 = vadd.f32 1.0, %v991_v30  ;;  %v990_v34 = vmul.f32 0.3275911, %v1713_v31  ;;  %v1716_v35 = vadd.f32 %v967_v62, %v948_v32  ;;  %v1094_v30 = vsub.f32 0.0, %v1713_v31 }
 0x48d   : > { %1340 = vrcp.f32 %v995_v33  ;;  %v994_v36 = vadd.f32 1.0, %v990_v34  ;;  %v1719_v39 = vmul.f32 0.70710677, %v1716_v35  ;;  %v1339_v29 = vpop.eup %1338  ;;  %v1038_v49 = vand.u32 2147483648, %v995_v33 }
 0x48e   : > { %v998_v42 = vmul.f32 %v1339_v29, %v993_v21  ;;  %vm1003_vm7 = vweird.f32 %v1339_v29  ;;  %v1036_v53 = vand.u32 2147483647, %v995_v33  ;;  %vm1032_vm10 = vweird.f32 %v995_v33 }
 0x48f   : > { %1342 = vrcp.f32 %v994_v36  ;;  %v1722_v40 = vand.u32 2147483647, %v1719_v39  ;;  %v1021_v55 = vand.u32 2147483647, %v994_v36  ;;  %v1023_v56 = vand.u32 2147483648, %v994_v36  ;;  %vm1734_vm12 = vmor %vm1002_vm6, %vm1003_vm7 }
 0x490   : > { %v999_v44 = vsub.f32 1.0, %v998_v42  ;;  %v1039_v63 = vor.u32 1.1754944e-38, %v1038_v49  ;;  %vm1017_vm14 = vweird.f32 %v994_v36  ;;  %vm1037_vm15 = vcmp.eq.f32.partialorder %v1036_v53, 8.507059e+37 }
 0x491   : > { %v992_v41 = vmul.f32 0.3275911, %v1722_v40  ;;  %vm1022_vm1 = vcmp.eq.f32.partialorder %v1021_v55, 8.507059e+37  ;;  %v1024_v7 = vor.u32 1.1754944e-38, %v1023_v56  ;;  %v1098_v45 = vmul.f32 %v1094_v30, %v1713_v31 }
 0x492   : > { %v1000_v50 = vmul.f32 %v1339_v29, %v999_v44  ;;  %vm979_vm6 = vcmp.ge.f32.partialorder %v1701_v22, 0.0  ;;  %vm980_vm7 = vcmp.ge.f32.partialorder %v1719_v39, 0.0  ;;  %v1124_v39 = vmul.f32 0.5, %v1716_v35 }
 0x493   : > { %v1341_v38 = vpop.eup %1340  ;;  %v1725_v43 = vadd.f32 1.0, %v992_v41  ;;  %v1099_v41 = vmul.f32 %v1095_v46, %v1706_v25  ;;  %v1103_v56 = vmul.f32 1.442695, %v1098_v45  ;;  %v1123_v45 = vmul.f32 0.5, %v1698_v18  ;;  %v1138_v18 = vpop.permute.xlu1 %1137 }
 0x494   : > { %v1028_v28 = vmul.f32 %v1341_v38, %v995_v33  ;;  %vm1033_vm8 = vweird.f32 %v1341_v38  ;;  %v1001_v57 = vadd.f32 %v1339_v29, %v1000_v50 }
 0x495   : > { %v1343_v37 = vpop.eup %1342  ;;  %1344 = vrcp.f32 %v1725_v43  ;;  %vm1034_vm13 = vmor %vm1032_vm10, %vm1033_vm8  ;;  %v1051_v16 = vand.u32 2147483647, %v1725_v43  ;;  %v1053_v17 = vand.u32 2147483648, %v1725_v43  ;;  %vm1047_vm3 = vweird.f32 %v1725_v43 }
 0x496   : > { %v1029_v47 = vsub.f32 1.0, %v1028_v28  ;;  %v1013_v48 = vmul.f32 %v1343_v37, %v994_v36  ;;  %vm1018_vm11 = vweird.f32 %v1343_v37  ;;  %v1005_v0 = vsel %vm1734_vm12, %v1339_v29, %v1001_v57 }
 0x497   : > { %vm1019_vm0 = vmor %vm1017_vm14, %vm1018_vm11  ;;  %v1743_v8 = vsel %vm1729_vm9, %v1009_v2, %v1005_v0  ;;  %v1093_v29 = vsub.f32 0.0, %v1695_v14  ;;  %vm1052_vm5 = vcmp.eq.f32.partialorder %v1051_v16, 8.507059e+37  ;;  %v1054_v42 = vor.u32 1.1754944e-38, %v1053_v17 }
 0x498   : > { %v1030_v52 = vmul.f32 %v1341_v38, %v1029_v47  ;;  %v1014_v54 = vsub.f32 1.0, %v1013_v48  ;;  %v1057_v15 = vmul.f32 1.0614054, %v1743_v8  ;;  %v1105_v46 = vmul.f32 1.442695, %v1099_v41 }
 0x499   : > { %v1097_v25 = vmul.f32 %v1093_v29, %v1695_v14  ;;  %vm978_vm8 = vcmp.ge.f32.partialorder %v1709_v26, 0.0  ;;  %vm977_vm9 = vcmp.ge.f32.partialorder %v1692_v11, 0.0  ;;  %v984_v29 = vsel %vm980_vm7, 1.0, %v1424_v1 }
 0x49a   : > { %v1031_v59 = vadd.f32 %v1341_v38, %v1030_v52  ;;  %v1015_v60 = vmul.f32 %v1343_v37, %v1014_v54  ;;  %v1061_v27 = vadd.f32 -1.4531521, %v1057_v15  ;;  %1346 = vpow2.f32 %v1105_v46 }
 0x49b   : > { %v1345_v62 = vpop.eup %1344  ;;  %v1101_v61 = vmul.f32 1.442695, %v1097_v25  ;;  %1348 = vpow2.f32 %v1103_v56  ;;  %v982_v22 = vsel %vm978_vm8, 1.0, %v1424_v1  ;;  %vm1140_vm10 = vcmask 261120  }
 0x49c   : > { %v1043_v3 = vmul.f32 %v1345_v62, %v1725_v43  ;;  %v1035_v4 = vsel %vm1034_vm13, %v1341_v38, %v1031_v59  ;;  %v1016_v5 = vadd.f32 %v1343_v37, %v1015_v60  ;;  %vm1048_vm2 = vweird.f32 %v1345_v62 }
 0x49d   : > { %v1040_v6 = vsel %vm1037_vm15, %v1039_v63, %v1035_v4  ;;  %v1065_v36 = vmul.f32 %v1061_v27, %v1743_v8  ;;  %vm1049_vm4 = vmor %vm1047_vm3, %vm1048_vm2  ;;  %v1096_v43 = vsub.f32 0.0, %v1722_v40  ;;  %1350 = vpow2.f32 %v1101_v61 }
 0x49e   : > { %v1044_v10 = vsub.f32 1.0, %v1043_v3  ;;  %v1059_v12 = vmul.f32 1.0614054, %v1040_v6  ;;  %v1020_v13 = vsel %vm1019_vm0, %v1343_v37, %v1016_v5  ;;  %vm1165_vm11 = vcmask 130048  }
 0x49f   : > { %v1025_v19 = vsel %vm1022_vm1, %v1024_v7, %v1020_v13  ;;  %v1069_v44 = vadd.f32 1.4214138, %v1065_v36  ;;  %v1100_v57 = vmul.f32 %v1096_v43, %v1722_v40 }
 0x4a0   : > { %v1045_v20 = vmul.f32 %v1345_v62, %v1044_v10  ;;  %v1063_v21 = vadd.f32 -1.4531521, %v1059_v12  ;;  %v1058_v24 = vmul.f32 1.0614054, %v1025_v19  ;;  %v1347_v40 = vpop.eup %1346 }
 0x4a1   : > { %v1073_v51 = vmul.f32 %v1069_v44, %v1743_v8  ;;  %v1107_v2 = vmul.f32 1.442695, %v1100_v57  ;;  %v1349_v16 = vpop.eup %1348 }
 0x4a2   : > { %v1046_v32 = vadd.f32 %v1345_v62, %v1045_v20  ;;  %v1067_v33 = vmul.f32 %v1063_v21, %v1040_v6  ;;  %v1062_v34 = vadd.f32 -1.4531521, %v1058_v24 }
 0x4a3   : > { %v1077_v55 = vadd.f32 -0.28449672, %v1073_v51  ;;  %1352 = vpow2.f32 %v1107_v2  ;;  %v1351_v21 = vpop.eup %1350 }
 0x4a4   : > { %v1050_v38 = vsel %vm1049_vm4, %v1345_v62, %v1046_v32  ;;  %v1071_v28 = vadd.f32 1.4214138, %v1067_v33  ;;  %v1066_v37 = vmul.f32 %v1062_v34, %v1025_v19  ;;  %v983_v33 = vsel %vm979_vm6, 1.0, %v1424_v1 }
 0x4a5   : > { %v1055_v47 = vsel %vm1052_vm5, %v1054_v42, %v1050_v38  ;;  %v1081_v60 = vmul.f32 %v1077_v55, %v1743_v8  ;;  %v981_v38 = vsel %vm977_vm9, 1.0, %v1424_v1  ;;  %v1121_v1 = vmul.f32 0.5, %v1689_v9 }
 0x4a6   : > { %v1060_v48 = vmul.f32 1.0614054, %v1055_v47  ;;  %v1075_v49 = vmul.f32 %v1071_v28, %v1040_v6  ;;  %v1070_v50 = vadd.f32 1.4214138, %v1066_v37 }
 0x4a7   : > { %v1085_v5 = vadd.f32 0.2548296, %v1081_v60 }
 0x4a8   : > { %v1064_v52 = vadd.f32 -1.4531521, %v1060_v48  ;;  %v1079_v53 = vadd.f32 -0.28449672, %v1075_v49  ;;  %v1074_v54 = vmul.f32 %v1070_v50, %v1025_v19  ;;  %v1133_v50 = vld [vmem:[%s1823_s15] sm:$0xff] }
 0x4a9   : > { %v1089_v15 = vmul.f32 %v1085_v5, %v1743_v8  ;;  %v1353_v30 = vpop.eup %1352 }
 0x4aa   : > { %v1068_v58 = vmul.f32 %v1064_v52, %v1055_v47  ;;  %v1083_v31 = vmul.f32 %v1079_v53, %v1040_v6  ;;  %v1078_v59 = vadd.f32 -0.28449672, %v1074_v54 }
 0x4ac   : > { %v1072_v62 = vadd.f32 1.4214138, %v1068_v58  ;;  %v1087_v63 = vadd.f32 0.2548296, %v1083_v31  ;;  %v1082_v0 = vmul.f32 %v1078_v59, %v1025_v19 }
 0x4ae   : > { %v1076_v14 = vmul.f32 %v1072_v62, %v1055_v47  ;;  %v1091_v3 = vmul.f32 %v1087_v63, %v1040_v6  ;;  %v1086_v4 = vadd.f32 0.2548296, %v1082_v0  ;;  %v1109_v6 = vmul.f32 %v1351_v21, %v1089_v15 }
 0x4b0   : > { %v1080_v7 = vadd.f32 -0.28449672, %v1076_v14  ;;  %v1090_v10 = vmul.f32 %v1086_v4, %v1025_v19  ;;  %v1111_v13 = vmul.f32 %v1347_v40, %v1091_v3  ;;  %v1113_v36 = vsub.f32 1.0, %v1109_v6 }
 0x4b2   : > { %v1084_v12 = vmul.f32 %v1080_v7, %v1055_v47  ;;  %v1110_v20 = vmul.f32 %v1349_v16, %v1090_v10  ;;  %v1115_v27 = vsub.f32 1.0, %v1111_v13  ;;  %v1117_v37 = vmul.f32 %v1113_v36, %v981_v38 }
 0x4b4   : > { %v1088_v17 = vadd.f32 0.2548296, %v1084_v12  ;;  %v1114_v19 = vsub.f32 1.0, %v1110_v20  ;;  %v1119_v8 = vmul.f32 %v1115_v27, %v983_v33  ;;  %v1125_v48 = vadd.f32 1.0, %v1117_v37 }
 0x4b6   : > { %v1092_v24 = vmul.f32 %v1088_v17, %v1055_v47  ;;  %v1118_v42 = vmul.f32 %v1114_v19, %v982_v22  ;;  %v1127_v26 = vadd.f32 1.0, %v1119_v8  ;;  %v1122_v47 = vmul.f32 0.5, %v1703_v23 }
 0x4b7   : > { %v1129_v35 = vmul.f32 %v1125_v48, %v1121_v1 }
 0x4b8   : > { %v1112_v32 = vmul.f32 %v1353_v30, %v1092_v24  ;;  %v1126_v43 = vadd.f32 1.0, %v1118_v42  ;;  %v1131_v11 = vmul.f32 %v1127_v26, %v1123_v45 }
 0x4ba   : > { %v1116_v34 = vsub.f32 1.0, %v1112_v32  ;;  %v1130_v49 = vmul.f32 %v1126_v43, %v1122_v47 }
 0x4bc   : > { %v1120_v41 = vmul.f32 %v1116_v34, %v984_v29 }
 0x4be   : > { %v1128_v28 = vadd.f32 1.0, %v1120_v41 }
 0x4c0   : > { %v1132_v44 = vmul.f32 %v1128_v28, %v1124_v39 }
 0x4c2   : > { %1156 = vmatpush.msrb.mxu3 %v1132_v44 }
 0x4c4   : > { %1157 = vmatpush.msrb.mxu3 %v1131_v11 }
 0x4c6   : > { %1158 = vmatpush.msrb.mxu3 %v1130_v49 }
 0x4c8   : > { %1159 = vmatpush.msrb.mxu3 %v1129_v35 }
 0x4c9   : > { %1255 = vmatmul.msk.f32.vlgmr.msrb.gmra.mxu3 %vm1140_vm10, %v1133_v50 }
 0x54c   : > { %v1161_v51 = vpop.f32.mrf.mxu3 }
 0x54d   : > { %v1162_v23 = vadd.f32 %v1161_v51, %v1138_v18 }
 0x54f   : > { %1354 = vtanh.f32 %v1162_v23 }
 0x555   : > { %v1355_v9 = vpop.eup %1354 }
 0x556   : > { %1166 = vst.msk [vmem:[%s539_s29] sm:$0xff] %vm1165_vm11, %v1355_v9 }
 0x557   : > { %1383 = shalt.err (!%p1380_p3)
}
 0x558   : > { %1266 = dma.vmem_to_hbm [thread:$0]  (%p1554_p5), %s1181_s30, 128, %s1183_s18, %s1168_s21  }
 0x559 PF: > { %p1272_p4 = scmp.ge.s32.totalorder %s1418_s27, 2  ;;  %s1194_s23 = sand.u32 1, %s1406_s24  }
 0x55a   : > { %s1195_s29 = scalar_lea.sflag [#allocation3], %s1194_s23 }
 0x55b   : > { %p1269_p7 = pnand %p1272_p4, %p1558_p6 }
 0x55d   : > { %p1270_p8 = pneg %p1269_p7 }
 0x55f   : > { %1401 = dma.done.wait (%p1270_p8), %s1195_s29, 128  }
 0x560   : > { %1403 = vsyncadd (%p1270_p8), %s1195_s29, 4294967168  ;;  %s1849_s27 = sld [smem:[#allocation6_spill]]  ;;  %s1852_s24 = smov %s1410_s25 }
 0x561   : > { %s1850_s3 = sld [smem:[#allocation5_spill]] }
 0x562   : > { %s1851_s26 = sld [smem:[#allocation7_spill]] }
 0x566   : > { %p27_p9 = scmp.ge.s32.totalorder %s1849_s27, 4  }
 0x567   : > { %s1853_s25 = smov %s1850_s3 }
 0x568   :  { %29 = sbr.rel (!%p27_p9) target bundleno = 8 (0x8), region = 123 }
 0x56d   :  { %1201 = vsyncpa [#allocation3], 1 }
 0x56e   :  { %1203 = vsyncpa [#allocation3 + $0x1], 1 }

</bundles_post_ra>
